<compile_context>
chip_gen: v7x
topology: tpu7x:2x2x1
jax: 0.10.0
libtpu: 0.0.40
codegen_flags: <defaults>
</compile_context>

<pallas_src>
import functools

import jax
import jax.numpy as jnp
from jax import lax
from jax.experimental import pallas as pl
from jax.experimental.pallas import tpu as pltpu


def _round_up(x, m):
    return (x + m - 1) // m * m


def dqn_kernel(x_ref, w1_ref, b1_ref, w2_ref, b2_ref, o_ref):
    # fc1 + ReLU: MXU matmul, f32 accumulation.
    h = jnp.dot(x_ref[...], w1_ref[...], preferred_element_type=jnp.float32)
    h = jnp.maximum(h + b1_ref[...], 0.0)              # b1 is (1, H) -> broadcast

    # TODO(synk): dropout is identity here (nn.Dropout in eval mode); training-mode
    # stochastic dropout would use pltpu.prng_seed / pltpu.prng_random_bits.

    # fc2 + ReLU: contract w2's hidden axis (1, H) with h's hidden axis
    # (TILE_B, H) -> (1, TILE_B).  Batch lands on the lane axis, so the output
    # store is lane-dense, and there is no N=1 column-starved MXU matmul.
    q = lax.dot_general(
        w2_ref[...], h,
        dimension_numbers=(((1,), (1,)), ((), ())),
        preferred_element_type=jnp.float32)
    o_ref[...] = jnp.maximum(q + b2_ref[0, 0], 0.0)    # b2 scalar read from SMEM


@functools.partial(jax.jit, static_argnames=("block_b", "compute_dtype"))
def deep_q_network_forward(x, w1, b1, w2, b2, *, block_b=512,
                           compute_dtype=jnp.float32):
    """x: [B, n_input]; w1: [n_input, n_hidden]; b1: [n_hidden];
    w2: [n_hidden, 1]; b2: [1].  Returns [B, 1] float32."""
    B, n_input = x.shape
    n_hidden = w1.shape[1]

    # Alignment / tiling (lane = 128, sublane = 8).  On v7x (64 MiB VMEM) use a
    # smaller block_b than on v5e/v6e if the layer widths are scaled up.
    in_p = _round_up(n_input, 8)            # K dim: sublane-align w1
    h_p = _round_up(n_hidden, 128)          # hidden dim: lane-align h / b1 / w2
    tile_b = min(_round_up(block_b, 128), _round_up(B, 128))
    b_pad = _round_up(B, tile_b)

    # Zero-padding is exact: zero K-columns add 0 in fc1, zero hidden units give
    # relu(0) = 0 and contribute 0 * w2 = 0 in fc2.  (In production, pad the
    # weights once at init instead of per call; they are tiny here.)
    w1p = jnp.zeros((in_p, h_p), compute_dtype).at[:n_input, :n_hidden].set(
        w1.astype(compute_dtype))
    b1p = jnp.zeros((1, h_p), jnp.float32).at[0, :n_hidden].set(
        b1.astype(jnp.float32))
    w2p = jnp.zeros((1, h_p), jnp.float32).at[0, :n_hidden].set(
        w2.reshape(-1).astype(jnp.float32))
    b2p = b2.reshape(1, 1).astype(jnp.float32)

    if (b_pad, in_p) == (B, n_input):
        xp = x.astype(compute_dtype)
    else:
        xp = jnp.zeros((b_pad, in_p), compute_dtype).at[:B, :n_input].set(
            x.astype(compute_dtype))

    grid = (b_pad // tile_b,)

    # Explicit VMEM budget: double-buffered x tile + resident weights + output
    # rows, with 2x headroom (clamped to a generation-safe 32 MiB ceiling).
    itemsize = jnp.dtype(compute_dtype).itemsize
    vmem_bytes = (2 * tile_b * in_p * itemsize      # x double-buffer
                  + 2 * in_p * h_p * itemsize       # w1 (worst case 2 buffers)
                  + 4 * h_p * 4 + 8                 # b1, w2, b2
                  + 2 * tile_b * 4)                 # output double-buffer
    vmem_limit = int(min(max(2 * vmem_bytes, 4 << 20), 32 << 20))

    out = pl.pallas_call(
        dqn_kernel,
        out_shape=jax.ShapeDtypeStruct((1, b_pad), jnp.float32),
        grid=grid,
        in_specs=[
            pl.BlockSpec((tile_b, in_p), lambda i: (i, 0)),      # x: streamed
            pl.BlockSpec((in_p, h_p), lambda i: (0, 0)),         # w1: resident
            pl.BlockSpec((1, h_p), lambda i: (0, 0)),            # b1: resident
            pl.BlockSpec((1, h_p), lambda i: (0, 0)),            # w2 row: resident
            pl.BlockSpec(memory_space=pltpu.MemorySpace.SMEM),   # b2: SMEM scalar
        ],
        out_specs=pl.BlockSpec((1, tile_b), lambda i: (0, i)),   # lane-dense out
        compiler_params=pltpu.CompilerParams(
            dimension_semantics=("parallel",),   # v7x: shard tiles over 2 TCs
            vmem_limit_bytes=vmem_limit,
        ),
    )(xp, w1p, b1p, w2p, b2p)

    return out[0, :B].reshape(B, 1)


def init_params(key, n_input, n_hidden):
    """Deterministic synthetic init (PyTorch-Linear-style uniform bounds)."""
    k1, k2, k3, k4 = jax.random.split(key, 4)
    bound1 = 1.0 / jnp.sqrt(n_input)
    bound2 = 1.0 / jnp.sqrt(n_hidden)
    # Stored pre-transposed relative to torch's [out, in] layout.
    w1 = jax.random.uniform(k1, (n_input, n_hidden), jnp.float32, -bound1, bound1)
    b1 = jax.random.uniform(k2, (n_hidden,), jnp.float32, -bound1, bound1)
    w2 = jax.random.uniform(k3, (n_hidden, 1), jnp.float32, -bound2, bound2)
    b2 = jax.random.uniform(k4, (1,), jnp.float32, -bound2, bound2)
    return w1, b1, w2, b2


if __name__ == "__main__":
    batch = 8
    n_input = 16
    n_hidden = 32

    key = jax.random.PRNGKey(0)
    kx, kp = jax.random.split(key)
    x = jax.random.normal(kx, (batch, n_input), jnp.float32)
    w1, b1, w2, b2 = init_params(kp, n_input, n_hidden)

    # f32 path (matches the PyTorch module's numerics).
    out = deep_q_network_forward(x, w1, b1, w2, b2)
    out = jax.block_until_ready(out)

    ref = jnp.maximum(jnp.maximum(x @ w1 + b1, 0.0) @ w2 + b2, 0.0)
    assert out.shape == (batch, 1)
    assert jnp.allclose(out, ref, atol=1e-4, rtol=1e-4)

    # bf16 matmul-input path (f32 accumulate): halves HBM traffic for x / w1.
    out_bf16 = deep_q_network_forward(x, w1, b1, w2, b2,
                                      compute_dtype=jnp.bfloat16)
    out_bf16 = jax.block_until_ready(out_bf16)
    assert out_bf16.shape == (batch, 1)
    assert jnp.allclose(out_bf16, ref, atol=5e-2, rtol=5e-2)

    print("KERNEL_OK")
</pallas_src>

<mosaic_0001>
module attributes {stable_mosaic.version = 11 : i64} {
  func.func @dqn_kernel(%arg0: i32, %arg1: memref<128x16xf32, #tpu.memory_space<vmem>>, %arg2: memref<16x128xf32, #tpu.memory_space<vmem>>, %arg3: memref<1x128xf32, #tpu.memory_space<vmem>>, %arg4: memref<1x128xf32, #tpu.memory_space<vmem>>, %arg5: memref<1x1xf32, #tpu.memory_space<smem>>, %arg6: memref<1x128xf32, #tpu.memory_space<vmem>>) attributes {dimension_semantics = [#tpu.dimension_semantics<parallel>], iteration_bounds = array<i64: 1>, scalar_prefetch = 0 : i64, scratch_operands = 0 : i64, tpu.core_type = #tpu.core_type<tc>, window_params = [{transform_indices = @transform_0, window_bounds = array<i64: 128, 16>}, {pipeline_mode = #tpu.pipeline_mode<synchronous>, transform_indices = @transform_1, window_bounds = array<i64: 16, 128>}, {pipeline_mode = #tpu.pipeline_mode<synchronous>, transform_indices = @transform_2, window_bounds = array<i64: 1, 128>}, {pipeline_mode = #tpu.pipeline_mode<synchronous>, transform_indices = @transform_3, window_bounds = array<i64: 1, 128>}, {transform_indices = @transform_4, window_bounds = array<i64: 1, 1>}, {transform_indices = @transform_5, window_bounds = array<i64: 1, 128>}]} {
    %c0 = arith.constant 0 : index
    %c0_0 = arith.constant 0 : index
    %0 = vector.load %arg1[%c0, %c0_0] : memref<128x16xf32, #tpu.memory_space<vmem>>, vector<128x16xf32>
    %c0_1 = arith.constant 0 : index
    %c0_2 = arith.constant 0 : index
    %1 = vector.load %arg2[%c0_1, %c0_2] : memref<16x128xf32, #tpu.memory_space<vmem>>, vector<16x128xf32>
    %cst = arith.constant dense<0.000000e+00> : vector<128x128xf32>
    %2 = tpu.matmul %0, %1, %cst {dimension_numbers = #tpu.dot_dimension_numbers<[1], [0], [0], [1], [0, 0, 1, 1], [], []>} : vector<128x16xf32>, vector<16x128xf32>, vector<128x128xf32> -> vector<128x128xf32>
    %c0_3 = arith.constant 0 : index
    %c0_4 = arith.constant 0 : index
    %3 = vector.load %arg3[%c0_3, %c0_4] : memref<1x128xf32, #tpu.memory_space<vmem>>, vector<1x128xf32>
    %4 = vector.broadcast %3 : vector<1x128xf32> to vector<128x128xf32>
    %5 = arith.addf %2, %4 : vector<128x128xf32>
    %cst_5 = arith.constant 0.000000e+00 : f32
    %6 = vector.broadcast %cst_5 : f32 to vector<128x128xf32>
    %7 = arith.maximumf %5, %6 : vector<128x128xf32>
    %c0_6 = arith.constant 0 : index
    %c0_7 = arith.constant 0 : index
    %8 = vector.load %arg4[%c0_6, %c0_7] : memref<1x128xf32, #tpu.memory_space<vmem>>, vector<1x128xf32>
    %cst_8 = arith.constant dense<0.000000e+00> : vector<1x128xf32>
    %9 = tpu.matmul %8, %7, %cst_8 {dimension_numbers = #tpu.dot_dimension_numbers<[1], [1], [0], [0], [0, 0, 1, 0], [], []>} : vector<1x128xf32>, vector<128x128xf32>, vector<1x128xf32> -> vector<1x128xf32>
    %c0_9 = arith.constant 0 : index
    %c0_10 = arith.constant 0 : index
    %10 = memref.load %arg5[%c0_9, %c0_10] : memref<1x1xf32, #tpu.memory_space<smem>>
    %11 = vector.broadcast %10 : f32 to vector<1x128xf32>
    %12 = arith.addf %9, %11 : vector<1x128xf32>
    %cst_11 = arith.constant 0.000000e+00 : f32
    %13 = vector.broadcast %cst_11 : f32 to vector<1x128xf32>
    %14 = arith.maximumf %12, %13 : vector<1x128xf32>
    %c0_12 = arith.constant 0 : index
    %c0_13 = arith.constant 0 : index
    %15 = vector.load %arg6[%c0_12, %c0_13] : memref<1x128xf32, #tpu.memory_space<vmem>>, vector<1x128xf32>
    tpu.vector_store %arg6[%c0_12, %c0_13], %14 {strides = array<i32>} : memref<1x128xf32, #tpu.memory_space<vmem>>, vector<1x128xf32>,
    return
  }
  func.func @transform_0(%arg0: i32) -> (i32, i32) {
    %c0_i32 = arith.constant 0 : i32
    %c0_i32_0 = arith.constant 0 : i32
    return %arg0, %c0_i32 : i32, i32
  }
  func.func @transform_1(%arg0: i32) -> (i32, i32) {
    %c0_i32 = arith.constant 0 : i32
    %c0_i32_0 = arith.constant 0 : i32
    %c0_i32_1 = arith.constant 0 : i32
    return %c0_i32, %c0_i32_0 : i32, i32
  }
  func.func @transform_2(%arg0: i32) -> (i32, i32) {
    %c0_i32 = arith.constant 0 : i32
    %c0_i32_0 = arith.constant 0 : i32
    %c0_i32_1 = arith.constant 0 : i32
    return %c0_i32, %c0_i32_0 : i32, i32
  }
  func.func @transform_3(%arg0: i32) -> (i32, i32) {
    %c0_i32 = arith.constant 0 : i32
    %c0_i32_0 = arith.constant 0 : i32
    %c0_i32_1 = arith.constant 0 : i32
    return %c0_i32, %c0_i32_0 : i32, i32
  }
  func.func @transform_4(%arg0: i32) -> (i32, i32) {
    %c0_i32 = arith.constant 0 : i32
    %c0_i32_0 = arith.constant 0 : i32
    %c0_i32_1 = arith.constant 0 : i32
    return %c0_i32, %c0_i32_0 : i32, i32
  }
  func.func @transform_5(%arg0: i32) -> (i32, i32) {
    %c0_i32 = arith.constant 0 : i32
    %c0_i32_0 = arith.constant 0 : i32
    return %c0_i32, %arg0 : i32, i32
  }
}

</mosaic_0001>

<bundles_post_ra>
// kernel: deep_q_network_forward.1
= control target key start
LH: loop header
LB: loop body
LE: loop exit
PB: predicated region body
PF: predicated region fallthrough
CT: control target
= control target key end

     0   :  { %vm46_vm0 = vcmask 130048   ;;  %v481_v19 = vmov 0.0|0.0   ;;  %vm482_vm1 = vmmov 0   ;;  %v483_v20 = vmov 0.0   ;;  %s604_s1 = inlined_call_operand.vmem [shape: f32[16,128], index: 1, kind: input, shape index: {}]   ;;  %s605_s0 = inlined_call_operand.vmem [shape: f32[128,16], index: 0, kind: input, shape index: {}]   ;;  %s606_s2 = inlined_call_operand.vmem [shape: f32[1,128], index: 2, kind: input, shape index: {}]   ;;  %s607_s3 = inlined_call_operand.vmem [shape: f32[1,128], index: 3, kind: input, shape index: {}]   ;;  %s608_s4 = inlined_call_operand.<no memory space> [shape: f32[1,1], index: 4, kind: input, shape index: {}]   ;;  %s609_s5 = inlined_call_operand.vmem [shape: f32[1,128], index: 5, kind: output, shape index: {}]  }
   0x1   :  { %v37_v0 = vld [vmem:[%s604_s1] sm:$0xff]  ;;  %v38_v1 = vld [vmem:[%s604_s1 + $0x8] sm:$0xff]  ;;  %v23_v5 = vld [vmem:[%s605_s0 + $0x10] sm:$0xff]  ;;  %454 = vmatprep.subr.bf16.mxu1 %v481_v19  ;;  %447 = vmatprep.mubr.msk.f32.mxu1 %vm482_vm1, %v483_v20 }
   0x2   :  { %v21_v2 = vld [vmem:[%s605_s0] sm:$0xff]  ;;  %v450_v3 = vpack.c.bf16 %v38_v1, %v37_v0  ;;  %v22_v4 = vld [vmem:[%s605_s0 + $0x8] sm:$0xff]  ;;  %v24_v6 = vld [vmem:[%s605_s0 + $0x18] sm:$0xff] }
   0x3   :  { %391 = vmatprep.mubr.msk.f32.mxu0 %vm46_vm0, %v21_v2  ;;  %v25_v7 = vld [vmem:[%s605_s0 + $0x20] sm:$0xff]  ;;  %v26_v8 = vld [vmem:[%s605_s0 + $0x28] sm:$0xff]  ;;  %v27_v9 = vld [vmem:[%s605_s0 + $0x30] sm:$0xff] }
   0x4   :  { %451 = vmatprep.subr.bf16.mxu0 %v450_v3  ;;  %v28_v10 = vld [vmem:[%s605_s0 + $0x38] sm:$0xff]  ;;  %v29_v11 = vld [vmem:[%s605_s0 + $0x40] sm:$0xff]  ;;  %v30_v12 = vld [vmem:[%s605_s0 + $0x48] sm:$0xff] }
   0x5   :  { %453 = vmatpush3.bf16.msra.mxu0 %v450_v3  ;;  %v31_v13 = vld [vmem:[%s605_s0 + $0x50] sm:$0xff]  ;;  %v32_v14 = vld [vmem:[%s605_s0 + $0x58] sm:$0xff]  ;;  %v33_v15 = vld [vmem:[%s605_s0 + $0x60] sm:$0xff] }
   0x6   :  { %v34_v16 = vld [vmem:[%s605_s0 + $0x68] sm:$0xff]  ;;  %v35_v17 = vld [vmem:[%s605_s0 + $0x70] sm:$0xff]  ;;  %v36_v18 = vld [vmem:[%s605_s0 + $0x78] sm:$0xff] }
   0x7   :  { %v335_v21 = vld [vmem:[%s606_s2] ss:$0 sm:$0xff] }
   0x8   :  { %392 = vmatmul.mubr.msk.f32.vlgmr.msra.gmra.mrb[0].mxu0 %vm46_vm0, %v22_v4 }
   0x9   :  { %394 = vmatprep.mubr.msk.f32.mxu0 %vm46_vm0, %v23_v5 }
   0xc   :  { %395 = vmatmul.mubr.msk.f32.gmra.mrb[2].mxu0 %vm46_vm0, %v24_v6 }
   0xd   :  { %397 = vmatprep.mubr.msk.f32.mxu0 %vm46_vm0, %v25_v7 }
  0x10   :  { %398 = vmatmul.mubr.msk.f32.gmra.mrb[4].mxu0 %vm46_vm0, %v26_v8 }
  0x11   :  { %400 = vmatprep.mubr.msk.f32.mxu0 %vm46_vm0, %v27_v9 }
  0x14   :  { %401 = vmatmul.mubr.msk.f32.gmra.mrb[6].mxu0 %vm46_vm0, %v28_v10 }
  0x15   :  { %403 = vmatprep.mubr.msk.f32.mxu0 %vm46_vm0, %v29_v11 }
  0x18   :  { %404 = vmatmul.mubr.msk.f32.gmra.mrb[8].mxu0 %vm46_vm0, %v30_v12 }
  0x19   :  { %406 = vmatprep.mubr.msk.f32.mxu0 %vm46_vm0, %v31_v13 }
  0x1c   :  { %407 = vmatmul.mubr.msk.f32.gmra.mrb[10].mxu0 %vm46_vm0, %v32_v14  ;;  %v256_v14 = vld [vmem:[%s607_s3] sm:$0x1] }
  0x1d   :  { %409 = vmatprep.mubr.msk.f32.mxu0 %vm46_vm0, %v33_v15  ;;  %v258_v15 = vstv %s608_s4 }
  0x20   :  { %410 = vmatmul.mubr.msk.f32.gmra.mrb[12].mxu0 %vm46_vm0, %v34_v16 }
  0x21   :  { %412 = vmatprep.mubr.msk.f32.mxu0 %vm46_vm0, %v35_v17 }
  0x24   :  { %413 = vmatmul.mubr.msk.f32.gmra.mrb[14].mxu0 %vm46_vm0, %v36_v18 }
  0xdb   :  { %v393_v22 = vpop.f32.mrb[0].mxu0 }
  0xdc   :  { %v167_v23 = vadd.f32 %v393_v22, %v335_v21  ;;  %v161_v24 = vpop.f32.mrb[1].mxu0 }
  0xdd   :  { %v162_v25 = vadd.f32 %v335_v21, %v161_v24 }
  0xde   :  { %v241_v26 = vmax.f32 %v167_v23, 0.0 }
  0xdf   :  { %v240_v27 = vmax.f32 %v162_v25, 0.0  ;;  %v396_v28 = vpop.f32.mrb[2].mxu0 }
  0xe0   :  { %v177_v29 = vadd.f32 %v396_v28, %v335_v21  ;;  %v171_v30 = vpop.f32.mrb[3].mxu0 }
  0xe1   :  { %v172_v31 = vadd.f32 %v335_v21, %v171_v30  ;;  %v455_v32 = vpack.c.bf16 %v241_v26, %v240_v27 }
  0xe2   :  { %v243_v33 = vmax.f32 %v177_v29, 0.0 }
  0xe3   :  { %v242_v34 = vmax.f32 %v172_v31, 0.0  ;;  %456 = vmatpush3.bf16.xpose.msra.mxu1 %v455_v32  ;;  %v399_v35 = vpop.f32.mrb[4].mxu0 }
  0xe4   :  { %v187_v36 = vadd.f32 %v399_v35, %v335_v21  ;;  %457 = vmatprep.subr.bf16.mxu1 %v481_v19  ;;  %v181_v37 = vpop.f32.mrb[5].mxu0 }
  0xe5   :  { %v458_v38 = vpack.c.bf16 %v243_v33, %v242_v34  ;;  %v182_v39 = vadd.f32 %v335_v21, %v181_v37 }
  0xe6   :  { %v245_v40 = vmax.f32 %v187_v36, 0.0 }
  0xe7   :  { %v244_v41 = vmax.f32 %v182_v39, 0.0  ;;  %v402_v42 = vpop.f32.mrb[6].mxu0 }
  0xe8   :  { %v197_v43 = vadd.f32 %v402_v42, %v335_v21  ;;  %v191_v44 = vpop.f32.mrb[7].mxu0 }
  0xe9   :  { %v461_v45 = vpack.c.bf16 %v245_v40, %v244_v41  ;;  %v192_v46 = vadd.f32 %v335_v21, %v191_v44 }
  0xea   :  { %v247_v47 = vmax.f32 %v197_v43, 0.0 }
  0xeb   :  { %459 = vmatpush3.bf16.xpose.msra.mxu1 %v458_v38  ;;  %v246_v48 = vmax.f32 %v192_v46, 0.0  ;;  %v405_v49 = vpop.f32.mrb[8].mxu0 }
  0xec   :  { %460 = vmatprep.subr.bf16.mxu1 %v481_v19  ;;  %v207_v50 = vadd.f32 %v405_v49, %v335_v21  ;;  %v201_v51 = vpop.f32.mrb[9].mxu0 }
  0xed   :  { %v464_v52 = vpack.c.bf16 %v247_v47, %v246_v48  ;;  %v202_v53 = vadd.f32 %v335_v21, %v201_v51 }
  0xee   :  { %v249_v54 = vmax.f32 %v207_v50, 0.0 }
  0xef   :  { %v248_v55 = vmax.f32 %v202_v53, 0.0  ;;  %v408_v56 = vpop.f32.mrb[10].mxu0 }
  0xf0   :  { %v217_v57 = vadd.f32 %v408_v56, %v335_v21  ;;  %v211_v58 = vpop.f32.mrb[11].mxu0 }
  0xf1   :  { %v467_v59 = vpack.c.bf16 %v249_v54, %v248_v55  ;;  %v212_v60 = vadd.f32 %v335_v21, %v211_v58 }
  0xf2   :  { %v251_v61 = vmax.f32 %v217_v57, 0.0 }
  0xf3   :  { %462 = vmatpush3.bf16.xpose.msra.mxu1 %v461_v45  ;;  %v250_v62 = vmax.f32 %v212_v60, 0.0  ;;  %v411_v63 = vpop.f32.mrb[12].mxu0 }
  0xf4   :  { %463 = vmatprep.subr.bf16.mxu1 %v481_v19  ;;  %v227_v0 = vadd.f32 %v411_v63, %v335_v21  ;;  %v221_v1 = vpop.f32.mrb[13].mxu0 }
  0xf5   :  { %v470_v2 = vpack.c.bf16 %v251_v61, %v250_v62  ;;  %v222_v3 = vadd.f32 %v335_v21, %v221_v1 }
  0xf6   :  { %v253_v4 = vmax.f32 %v227_v0, 0.0 }
  0xf7   :  { %v252_v5 = vmax.f32 %v222_v3, 0.0  ;;  %v414_v6 = vpop.f32.mrb[14].mxu0 }
  0xf8   :  { %v237_v7 = vadd.f32 %v414_v6, %v335_v21  ;;  %v231_v8 = vpop.f32.mrb[15].mxu0 }
  0xf9   :  { %v473_v9 = vpack.c.bf16 %v253_v4, %v252_v5  ;;  %v232_v10 = vadd.f32 %v335_v21, %v231_v8 }
  0xfa   :  { %v255_v11 = vmax.f32 %v237_v7, 0.0 }
  0xfb   :  { %465 = vmatpush3.bf16.xpose.msra.mxu1 %v464_v52  ;;  %v254_v12 = vmax.f32 %v232_v10, 0.0 }
  0xfc   :  { %466 = vmatprep.subr.bf16.mxu1 %v481_v19 }
  0xfd   :  { %v476_v13 = vpack.c.bf16 %v255_v11, %v254_v12 }
 0x103   :  { %468 = vmatpush3.bf16.xpose.msra.mxu1 %v467_v59 }
 0x104   :  { %469 = vmatprep.subr.bf16.mxu1 %v481_v19 }
 0x10b   :  { %471 = vmatpush3.bf16.xpose.msra.mxu1 %v470_v2 }
 0x10c   :  { %472 = vmatprep.subr.bf16.mxu1 %v481_v19 }
 0x113   :  { %474 = vmatpush3.bf16.xpose.msra.mxu1 %v473_v9 }
 0x114   :  { %475 = vmatprep.subr.bf16.mxu1 %v481_v19 }
 0x11b   :  { %477 = vmatpush3.bf16.xpose.msra.mxu1 %v476_v13 }
 0x122   :  { %448 = vmatmul.mubr.f32.vlgmr.msra.gmra.mrb[0].mxu1 %v256_v14 }
 0x1f5   :  { %v325_v16 = vpop.f32.mrb[0].mxu1 }
 0x1f6   :  { %v326_v17 = vadd.f32 %v325_v16, %v258_v15  ;;  %v449_v18 = vpop.f32.mrb[1].mxu1 }
 0x1f8   :  { %v329_v20 = vmax.f32 %v326_v17, 0.0 }
 0x1fa   :  { %330 = vst [vmem:[%s609_s5] sm:$0x1] %v329_v20 }

</bundles_post_ra>
